<compile_context>
chip_gen: v6e
topology: v6e:2x2x1
jax: 0.10.0
libtpu: 0.0.40
codegen_flags: <defaults>
</compile_context>

<pallas_src>
import functools

import jax
import jax.numpy as jnp
from jax.experimental import pallas as pl
from jax.experimental.pallas import tpu as pltpu

_EPS = 1e-5
_LANE = 128
_SUBLANE = 8


def _round_up(n, m):
    return ((n + m - 1) // m) * m


def _fused_linear_bn3_kernel(
    x_ref, mask_ref,
    w1_ref, g1_ref, be1_ref,
    w2_ref, g2_ref, be2_ref,
    w3_ref, g3_ref, be3_ref,
    o_ref,
    *, n_valid, apply_mask, compute_dtype,
):
    """Three fused (Linear [no bias] + BatchNorm1d train-mode) layers.

    All operands are whole (lane-padded) arrays resident in VMEM; intermediates live
    in vregs. Weights are pre-transposed to (Din_pad, Dout_pad) and pre-cast to the
    MXU compute dtype; gamma/beta are (1, Dout_pad) f32.
    """
    inv_n = jnp.float32(1.0 / n_valid)
    mask = mask_ref[...] if apply_mask else None   # (B_pad, 1) f32, 1 on valid rows

    def layer(h, w_ref, g_ref, be_ref):
        # MXU matmul: bf16 (or f32) operands, f32 accumulation.
        y = jnp.dot(h.astype(compute_dtype), w_ref[...],
                    preferred_element_type=jnp.float32)
        # BatchNorm1d training mode: one traversal accumulates sum and sum-of-squares.
        ym = y if mask is None else y * mask
        s1 = jnp.sum(ym, axis=0, keepdims=True)
        s2 = jnp.sum(ym * y, axis=0, keepdims=True)
        mean = s1 * inv_n
        var = jnp.maximum(s2 * inv_n - mean * mean, 0.0)   # clamp f32 rounding
        scale = g_ref[...] * jax.lax.rsqrt(var + jnp.float32(_EPS))   # EUP rsqrt
        return (y - mean) * scale + be_ref[...]

    h = x_ref[...]
    h = layer(h, w1_ref, g1_ref, be1_ref)
    h = layer(h, w2_ref, g2_ref, be2_ref)
    h = layer(h, w3_ref, g3_ref, be3_ref)
    o_ref[...] = h.astype(o_ref.dtype)


def linear_net_forward_pallas(x, params, compute_dtype=jnp.float32):
    """Single fused pallas_call for the whole Linear_net forward pass.

    Pads batch to a multiple of 8 sublanes and every feature dim to a multiple of
    128 lanes, runs the fused kernel on the padded operands, then slices the
    (B, dim_out) result back out.
    """
    B, dim_in = x.shape
    dim_out = params[-1]["w_t"].shape[1]

    B_pad = max(_SUBLANE, _round_up(B, _SUBLANE))
    din_pad = _round_up(dim_in, _LANE)

    x_pad = jnp.pad(x.astype(jnp.float32), ((0, B_pad - B), (0, din_pad - dim_in)))
    row_mask = (jnp.arange(B_pad, dtype=jnp.int32) < B).astype(jnp.float32)
    row_mask = row_mask.reshape(B_pad, 1)

    flat_inputs = [x_pad, row_mask]
    flops = 0
    prev_pad = din_pad
    for p in params:
        din, dout = p["w_t"].shape
        dout_pad = _round_up(dout, _LANE)
        w_pad = jnp.pad(p["w_t"].astype(compute_dtype),
                        ((0, prev_pad - din), (0, dout_pad - dout)))
        g_pad = jnp.pad(p["gamma"], ((0, 0), (0, dout_pad - dout)))
        b_pad = jnp.pad(p["beta"], ((0, 0), (0, dout_pad - dout)))
        flat_inputs += [w_pad, g_pad, b_pad]
        flops += 2 * B_pad * prev_pad * dout_pad
        prev_pad = dout_pad
    dout_pad_last = prev_pad

    transcendentals = sum(_round_up(p["w_t"].shape[1], _LANE) for p in params)
    bytes_accessed = (
        sum(int(a.size) * a.dtype.itemsize for a in flat_inputs)
        + B_pad * dout_pad_last * 4
    )

    kernel = functools.partial(
        _fused_linear_bn3_kernel,
        n_valid=B,
        apply_mask=(B != B_pad),
        compute_dtype=compute_dtype,
    )

    vmem_spec = pl.BlockSpec(memory_space=pltpu.MemorySpace.VMEM)
    out_pad = pl.pallas_call(
        kernel,
        out_shape=jax.ShapeDtypeStruct((B_pad, dout_pad_last), jnp.float32),
        in_specs=[vmem_spec] * len(flat_inputs),
        out_specs=vmem_spec,
        cost_estimate=pl.CostEstimate(
            flops=flops,
            transcendentals=transcendentals,
            bytes_accessed=bytes_accessed,
        ),
    )(*flat_inputs)

    return out_pad[:B, :dim_out]


linear_net_forward = jax.jit(linear_net_forward_pallas,
                             static_argnames=("compute_dtype",))


def init_linear_net_params(key, dim_in, dim_out):
    """Deterministic parameters matching Linear_net(dim_in, dim_out) shapes."""
    dim_layer = [dim_in, 2 * dim_in, 2 * dim_out, dim_out]
    params = []
    for i in range(len(dim_layer) - 1):
        fan_in, fan_out = dim_layer[i], dim_layer[i + 1]
        key, kw, kb = jax.random.split(key, 3)
        bound = 1.0 / jnp.sqrt(fan_in)
        # nn.Linear weight is (out, in); store transposed (in, out) for the kernel.
        w = jax.random.uniform(kw, (fan_out, fan_in), jnp.float32, -bound, bound)
        b = jax.random.uniform(kb, (fan_out,), jnp.float32, -bound, bound)
        gamma = jnp.ones((fan_out,), jnp.float32)   # BatchNorm1d default weight
        beta = jnp.zeros((fan_out,), jnp.float32)   # BatchNorm1d default bias
        params.append(
            dict(
                w_t=w.T,
                b=b.reshape(1, fan_out),            # only used by the reference check
                gamma=gamma.reshape(1, fan_out),
                beta=beta.reshape(1, fan_out),
            )
        )
    return params


def _reference_forward(x, params):
    """Pure-JAX reference with full PyTorch semantics (including Linear bias)."""
    for p in params:
        y = x @ p["w_t"] + p["b"]
        mean = jnp.mean(y, axis=0, keepdims=True)
        var = jnp.mean((y - mean) ** 2, axis=0, keepdims=True)
        x = (y - mean) * jax.lax.rsqrt(var + _EPS) * p["gamma"] + p["beta"]
    return x


if __name__ == "__main__":
    key = jax.random.PRNGKey(0)
    batch, dim_in, dim_out = 8, 16, 8          # layer dims: [16, 32, 16, 8]
    kx, kp = jax.random.split(key)
    x = jax.random.normal(kx, (batch, dim_in), jnp.float32)
    params = init_linear_net_params(kp, dim_in, dim_out)

    # f32 MXU path (exact vs. reference).
    out = jax.block_until_ready(linear_net_forward(x, params))
    ref = _reference_forward(x, params)
    assert out.shape == (batch, dim_out)
    assert jnp.allclose(out, ref, atol=1e-4, rtol=1e-4)

    # Ragged batch (B=5 -> padded to 8 sublanes) exercises the masked BN statistics.
    xr = x[:5]
    out_r = jax.block_until_ready(linear_net_forward(xr, params))
    ref_r = _reference_forward(xr, params)
    assert out_r.shape == (5, dim_out)
    assert jnp.allclose(out_r, ref_r, atol=1e-4, rtol=1e-4)

    # bf16 MXU operands (v6e/v7x fast path), f32 accumulation + f32 BN statistics.
    out_bf16 = jax.block_until_ready(
        linear_net_forward(x, params, compute_dtype=jnp.bfloat16))
    assert out_bf16.shape == (batch, dim_out)
    assert jnp.allclose(out_bf16, ref, atol=5e-2, rtol=5e-2)

    print("KERNEL_OK")
</pallas_src>

<mosaic_0001>
module attributes {stable_mosaic.version = 11 : i64} {
  func.func @_fused_linear_bn3_kernel(%arg0: memref<8x128xf32, #tpu.memory_space<vmem>>, %arg1: memref<8x1xf32, #tpu.memory_space<vmem>>, %arg2: memref<128x128xf32, #tpu.memory_space<vmem>>, %arg3: memref<1x128xf32, #tpu.memory_space<vmem>>, %arg4: memref<1x128xf32, #tpu.memory_space<vmem>>, %arg5: memref<128x128xf32, #tpu.memory_space<vmem>>, %arg6: memref<1x128xf32, #tpu.memory_space<vmem>>, %arg7: memref<1x128xf32, #tpu.memory_space<vmem>>, %arg8: memref<128x128xf32, #tpu.memory_space<vmem>>, %arg9: memref<1x128xf32, #tpu.memory_space<vmem>>, %arg10: memref<1x128xf32, #tpu.memory_space<vmem>>, %arg11: memref<8x128xf32, #tpu.memory_space<vmem>>) attributes {dimension_semantics = [], scalar_prefetch = 0 : i64, scratch_operands = 0 : i64, tpu.core_type = #tpu.core_type<tc>} {
    %c0 = arith.constant 0 : index
    %c0_0 = arith.constant 0 : index
    %0 = vector.load %arg0[%c0, %c0_0] : memref<8x128xf32, #tpu.memory_space<vmem>>, vector<8x128xf32>
    %c0_1 = arith.constant 0 : index
    %c0_2 = arith.constant 0 : index
    %1 = vector.load %arg2[%c0_1, %c0_2] : memref<128x128xf32, #tpu.memory_space<vmem>>, vector<128x128xf32>
    %cst = arith.constant dense<0.000000e+00> : vector<8x128xf32>
    %2 = tpu.matmul %0, %1, %cst {dimension_numbers = #tpu.dot_dimension_numbers<[1], [0], [0], [1], [0, 0, 1, 1], [], []>} : vector<8x128xf32>, vector<128x128xf32>, vector<8x128xf32> -> vector<8x128xf32>
    %cst_3 = arith.constant dense<0.000000e+00> : vector<128xf32>
    %3 = vector.multi_reduction <add>, %2, %cst_3 [0] : vector<8x128xf32> to vector<128xf32>
    %4 = vector.shape_cast %3 : vector<128xf32> to vector<1x128xf32>
    %5 = arith.mulf %2, %2 : vector<8x128xf32>
    %cst_4 = arith.constant dense<0.000000e+00> : vector<128xf32>
    %6 = vector.multi_reduction <add>, %5, %cst_4 [0] : vector<8x128xf32> to vector<128xf32>
    %7 = vector.shape_cast %6 : vector<128xf32> to vector<1x128xf32>
    %cst_5 = arith.constant 1.250000e-01 : f32
    %8 = vector.broadcast %cst_5 : f32 to vector<1x128xf32>
    %9 = arith.mulf %4, %8 : vector<1x128xf32>
    %cst_6 = arith.constant 1.250000e-01 : f32
    %10 = vector.broadcast %cst_6 : f32 to vector<1x128xf32>
    %11 = arith.mulf %7, %10 : vector<1x128xf32>
    %12 = arith.mulf %9, %9 : vector<1x128xf32>
    %13 = arith.subf %11, %12 : vector<1x128xf32>
    %cst_7 = arith.constant 0.000000e+00 : f32
    %14 = vector.broadcast %cst_7 : f32 to vector<1x128xf32>
    %15 = arith.maximumf %13, %14 : vector<1x128xf32>
    %c0_8 = arith.constant 0 : index
    %c0_9 = arith.constant 0 : index
    %16 = vector.load %arg3[%c0_8, %c0_9] : memref<1x128xf32, #tpu.memory_space<vmem>>, vector<1x128xf32>
    %cst_10 = arith.constant 9.99999974E-6 : f32
    %17 = vector.broadcast %cst_10 : f32 to vector<1x128xf32>
    %18 = arith.addf %15, %17 : vector<1x128xf32>
    %19 = math.rsqrt %18 : vector<1x128xf32>
    %20 = arith.mulf %16, %19 : vector<1x128xf32>
    %21 = vector.broadcast %9 : vector<1x128xf32> to vector<8x128xf32>
    %22 = arith.subf %2, %21 : vector<8x128xf32>
    %23 = vector.broadcast %20 : vector<1x128xf32> to vector<8x128xf32>
    %24 = arith.mulf %22, %23 : vector<8x128xf32>
    %c0_11 = arith.constant 0 : index
    %c0_12 = arith.constant 0 : index
    %25 = vector.load %arg4[%c0_11, %c0_12] : memref<1x128xf32, #tpu.memory_space<vmem>>, vector<1x128xf32>
    %26 = vector.broadcast %25 : vector<1x128xf32> to vector<8x128xf32>
    %27 = arith.addf %24, %26 : vector<8x128xf32>
    %c0_13 = arith.constant 0 : index
    %c0_14 = arith.constant 0 : index
    %28 = vector.load %arg5[%c0_13, %c0_14] : memref<128x128xf32, #tpu.memory_space<vmem>>, vector<128x128xf32>
    %cst_15 = arith.constant dense<0.000000e+00> : vector<8x128xf32>
    %29 = tpu.matmul %27, %28, %cst_15 {dimension_numbers = #tpu.dot_dimension_numbers<[1], [0], [0], [1], [0, 0, 1, 1], [], []>} : vector<8x128xf32>, vector<128x128xf32>, vector<8x128xf32> -> vector<8x128xf32>
    %cst_16 = arith.constant dense<0.000000e+00> : vector<128xf32>
    %30 = vector.multi_reduction <add>, %29, %cst_16 [0] : vector<8x128xf32> to vector<128xf32>
    %31 = vector.shape_cast %30 : vector<128xf32> to vector<1x128xf32>
    %32 = arith.mulf %29, %29 : vector<8x128xf32>
    %cst_17 = arith.constant dense<0.000000e+00> : vector<128xf32>
    %33 = vector.multi_reduction <add>, %32, %cst_17 [0] : vector<8x128xf32> to vector<128xf32>
    %34 = vector.shape_cast %33 : vector<128xf32> to vector<1x128xf32>
    %cst_18 = arith.constant 1.250000e-01 : f32
    %35 = vector.broadcast %cst_18 : f32 to vector<1x128xf32>
    %36 = arith.mulf %31, %35 : vector<1x128xf32>
    %cst_19 = arith.constant 1.250000e-01 : f32
    %37 = vector.broadcast %cst_19 : f32 to vector<1x128xf32>
    %38 = arith.mulf %34, %37 : vector<1x128xf32>
    %39 = arith.mulf %36, %36 : vector<1x128xf32>
    %40 = arith.subf %38, %39 : vector<1x128xf32>
    %cst_20 = arith.constant 0.000000e+00 : f32
    %41 = vector.broadcast %cst_20 : f32 to vector<1x128xf32>
    %42 = arith.maximumf %40, %41 : vector<1x128xf32>
    %c0_21 = arith.constant 0 : index
    %c0_22 = arith.constant 0 : index
    %43 = vector.load %arg6[%c0_21, %c0_22] : memref<1x128xf32, #tpu.memory_space<vmem>>, vector<1x128xf32>
    %cst_23 = arith.constant 9.99999974E-6 : f32
    %44 = vector.broadcast %cst_23 : f32 to vector<1x128xf32>
    %45 = arith.addf %42, %44 : vector<1x128xf32>
    %46 = math.rsqrt %45 : vector<1x128xf32>
    %47 = arith.mulf %43, %46 : vector<1x128xf32>
    %48 = vector.broadcast %36 : vector<1x128xf32> to vector<8x128xf32>
    %49 = arith.subf %29, %48 : vector<8x128xf32>
    %50 = vector.broadcast %47 : vector<1x128xf32> to vector<8x128xf32>
    %51 = arith.mulf %49, %50 : vector<8x128xf32>
    %c0_24 = arith.constant 0 : index
    %c0_25 = arith.constant 0 : index
    %52 = vector.load %arg7[%c0_24, %c0_25] : memref<1x128xf32, #tpu.memory_space<vmem>>, vector<1x128xf32>
    %53 = vector.broadcast %52 : vector<1x128xf32> to vector<8x128xf32>
    %54 = arith.addf %51, %53 : vector<8x128xf32>
    %c0_26 = arith.constant 0 : index
    %c0_27 = arith.constant 0 : index
    %55 = vector.load %arg8[%c0_26, %c0_27] : memref<128x128xf32, #tpu.memory_space<vmem>>, vector<128x128xf32>
    %cst_28 = arith.constant dense<0.000000e+00> : vector<8x128xf32>
    %56 = tpu.matmul %54, %55, %cst_28 {dimension_numbers = #tpu.dot_dimension_numbers<[1], [0], [0], [1], [0, 0, 1, 1], [], []>} : vector<8x128xf32>, vector<128x128xf32>, vector<8x128xf32> -> vector<8x128xf32>
    %cst_29 = arith.constant dense<0.000000e+00> : vector<128xf32>
    %57 = vector.multi_reduction <add>, %56, %cst_29 [0] : vector<8x128xf32> to vector<128xf32>
    %58 = vector.shape_cast %57 : vector<128xf32> to vector<1x128xf32>
    %59 = arith.mulf %56, %56 : vector<8x128xf32>
    %cst_30 = arith.constant dense<0.000000e+00> : vector<128xf32>
    %60 = vector.multi_reduction <add>, %59, %cst_30 [0] : vector<8x128xf32> to vector<128xf32>
    %61 = vector.shape_cast %60 : vector<128xf32> to vector<1x128xf32>
    %cst_31 = arith.constant 1.250000e-01 : f32
    %62 = vector.broadcast %cst_31 : f32 to vector<1x128xf32>
    %63 = arith.mulf %58, %62 : vector<1x128xf32>
    %cst_32 = arith.constant 1.250000e-01 : f32
    %64 = vector.broadcast %cst_32 : f32 to vector<1x128xf32>
    %65 = arith.mulf %61, %64 : vector<1x128xf32>
    %66 = arith.mulf %63, %63 : vector<1x128xf32>
    %67 = arith.subf %65, %66 : vector<1x128xf32>
    %cst_33 = arith.constant 0.000000e+00 : f32
    %68 = vector.broadcast %cst_33 : f32 to vector<1x128xf32>
    %69 = arith.maximumf %67, %68 : vector<1x128xf32>
    %c0_34 = arith.constant 0 : index
    %c0_35 = arith.constant 0 : index
    %70 = vector.load %arg9[%c0_34, %c0_35] : memref<1x128xf32, #tpu.memory_space<vmem>>, vector<1x128xf32>
    %cst_36 = arith.constant 9.99999974E-6 : f32
    %71 = vector.broadcast %cst_36 : f32 to vector<1x128xf32>
    %72 = arith.addf %69, %71 : vector<1x128xf32>
    %73 = math.rsqrt %72 : vector<1x128xf32>
    %74 = arith.mulf %70, %73 : vector<1x128xf32>
    %75 = vector.broadcast %63 : vector<1x128xf32> to vector<8x128xf32>
    %76 = arith.subf %56, %75 : vector<8x128xf32>
    %77 = vector.broadcast %74 : vector<1x128xf32> to vector<8x128xf32>
    %78 = arith.mulf %76, %77 : vector<8x128xf32>
    %c0_37 = arith.constant 0 : index
    %c0_38 = arith.constant 0 : index
    %79 = vector.load %arg10[%c0_37, %c0_38] : memref<1x128xf32, #tpu.memory_space<vmem>>, vector<1x128xf32>
    %80 = vector.broadcast %79 : vector<1x128xf32> to vector<8x128xf32>
    %81 = arith.addf %78, %80 : vector<8x128xf32>
    %c0_39 = arith.constant 0 : index
    %c0_40 = arith.constant 0 : index
    %82 = vector.load %arg11[%c0_39, %c0_40] : memref<8x128xf32, #tpu.memory_space<vmem>>, vector<8x128xf32>
    tpu.vector_store %arg11[%c0_39, %c0_40], %81 {strides = array<i32>} : memref<8x128xf32, #tpu.memory_space<vmem>>, vector<8x128xf32>,
    return
  }
}

</mosaic_0001>

<bundles_post_ra>
// kernel: linear_net_forward_pallas.1
= control target key start
LH: loop header
LB: loop body
LE: loop exit
PB: predicated region body
PF: predicated region fallthrough
CT: control target
= control target key end

     0   :  { %v617_v1 = vmov 0.0   ;;  %vm618_vm0 = vmmov 0   ;;  %s907_s0 = inlined_call_operand.vmem [shape: f32[8,128], index: 0, kind: input, shape index: {}]   ;;  %s908_s1 = inlined_call_operand.vmem [shape: f32[8,1], index: 1, kind: input, shape index: {}]   ;;  %s909_s2 = inlined_call_operand.vmem [shape: f32[128,128], index: 2, kind: input, shape index: {}]   ;;  %s910_s3 = inlined_call_operand.vmem [shape: f32[1,128], index: 3, kind: input, shape index: {}]   ;;  %s911_s4 = inlined_call_operand.vmem [shape: f32[1,128], index: 4, kind: input, shape index: {}]   ;;  %s912_s5 = inlined_call_operand.vmem [shape: f32[128,128], index: 5, kind: input, shape index: {}]   ;;  %s913_s6 = inlined_call_operand.vmem [shape: f32[1,128], index: 6, kind: input, shape index: {}]   ;;  %s914_s7 = inlined_call_operand.vmem [shape: f32[1,128], index: 7, kind: input, shape index: {}]   ;;  %s915_s8 = inlined_call_operand.vmem [shape: f32[128,128], index: 8, kind: input, shape index: {}]   ;;  %s916_s9 = inlined_call_operand.vmem [shape: f32[1,128], index: 9, kind: input, shape index: {}]   ;;  %s917_s10 = inlined_call_operand.vmem [shape: f32[1,128], index: 10, kind: input, shape index: {}]   ;;  %s918_s11 = inlined_call_operand.hbm [shape: f32[8,128], index: 11, kind: output, shape index: {}]  }
   0x1   :  { %v55_v0 = vld [vmem:[%s909_s2 + $0x78] sm:$0xff]  ;;  %481 = vmatprep.subr.mxu0 %v617_v1  ;;  %v54_v2 = vld [vmem:[%s909_s2 + $0x70] sm:$0xff]  ;;  %513 = vmatprep.mubr.msk.f32.mxu0 %vm618_vm0, %v617_v1  ;;  %v53_v3 = vld [vmem:[%s909_s2 + $0x68] sm:$0xff] }
   0x2   :  { %482 = vmatpush3.msra.mxu0 %v55_v0  ;;  %516 = vmatprep.subr.mxu1 %v617_v1  ;;  %v52_v4 = vld [vmem:[%s909_s2 + $0x60] sm:$0xff] }
   0x3   :  { %483 = vmatprep.subr.mxu0 %v617_v1  ;;  %548 = vmatprep.mubr.msk.f32.mxu1 %vm618_vm0, %v617_v1 }
   0x4   :  { %484 = vmatpush3.msra.mxu0 %v54_v2 }
   0x5   :  { %485 = vmatprep.subr.mxu0 %v617_v1 }
   0x6   :  { %16 = vsyncpa [#allocation3], 0  ;;  %486 = vmatpush3.msra.mxu0 %v53_v3  ;;  %v51_v5 = vld [vmem:[%s909_s2 + $0x58] sm:$0xff]  ;;  %v50_v6 = vld [vmem:[%s909_s2 + $0x50] sm:$0xff]  ;;  %v150_v55 = vlaneseq  ;;  %s619_s30 = smov [#allocation2]  }
   0x7   :  { %487 = vmatprep.subr.mxu0 %v617_v1  ;;  %v49_v7 = vld [vmem:[%s909_s2 + $0x48] sm:$0xff]  ;;  %v48_v8 = vld [vmem:[%s909_s2 + $0x40] sm:$0xff]  ;;  %v47_v9 = vld [vmem:[%s909_s2 + $0x38] sm:$0xff] }
   0x8   :  { %488 = vmatpush3.msra.mxu0 %v52_v4  ;;  %v46_v10 = vld [vmem:[%s909_s2 + $0x30] sm:$0xff]  ;;  %v45_v11 = vld [vmem:[%s909_s2 + $0x28] sm:$0xff]  ;;  %v44_v12 = vld [vmem:[%s909_s2 + $0x20] sm:$0xff]  ;;  %v151_v56 = vshrl.u32 %v150_v55, 7 }
   0x9   :  { %489 = vmatprep.subr.mxu0 %v617_v1  ;;  %v43_v13 = vld [vmem:[%s909_s2 + $0x18] sm:$0xff]  ;;  %v42_v14 = vld [vmem:[%s909_s2 + $0x10] sm:$0xff]  ;;  %v41_v15 = vld [vmem:[%s909_s2 + $0x8] sm:$0xff] }
   0xa   :  { %490 = vmatpush3.msra.mxu0 %v51_v5  ;;  %v40_v16 = vld [vmem:[%s909_s2] sm:$0xff]  ;;  %v179_v18 = vld [vmem:[%s912_s5 + $0x78] sm:$0xff]  ;;  %v178_v19 = vld [vmem:[%s912_s5 + $0x70] sm:$0xff]  ;;  %v821_v58 = vsub.s32 0, %v151_v56  ;;  %s419_s2 = sshll.u32 %s619_s30, 4  ;;  %s420_s2 = int_to_ptr.vmem [resolvable:$true] %s419_s2 }
   0xb   :  { %491 = vmatprep.subr.mxu0 %v617_v1  ;;  %v39_v17 = vld [vmem:[%s907_s0] sm:$0xff]  ;;  %517 = vmatpush3.msra.mxu1 %v179_v18  ;;  %v177_v20 = vld [vmem:[%s912_s5 + $0x68] sm:$0xff]  ;;  %v175_v22 = vld [vmem:[%s912_s5 + $0x58] sm:$0xff]  ;;  %s595_s12 = scalar_lea.vmem %s420_s2, 128  ;;  %p600_p1 = scmp.lt.s32.totalorder %s420_s2, %s420_s2 }
   0xc   :  { %492 = vmatpush3.msra.mxu0 %v50_v6  ;;  %518 = vmatprep.subr.mxu1 %v617_v1  ;;  %v176_v21 = vld [vmem:[%s912_s5 + $0x60] sm:$0xff]  ;;  %v174_v23 = vld [vmem:[%s912_s5 + $0x50] sm:$0xff]  ;;  %v173_v24 = vld [vmem:[%s912_s5 + $0x48] sm:$0xff]  ;;  %p596_p0 = scmp.ne.s32.totalorder %s420_s2, %s595_s12  ;;  %p601_p2 = scmp.lt.s32.totalorder %s595_s12, %s595_s12 }
   0xd   :  { %493 = vmatprep.subr.mxu0 %v617_v1  ;;  %519 = vmatpush3.msra.mxu1 %v178_v19  ;;  %v172_v25 = vld [vmem:[%s912_s5 + $0x40] sm:$0xff]  ;;  %v171_v26 = vld [vmem:[%s912_s5 + $0x38] sm:$0xff]  ;;  %v170_v27 = vld [vmem:[%s912_s5 + $0x30] sm:$0xff] }
   0xe   :  { %494 = vmatpush3.msra.mxu0 %v49_v7  ;;  %520 = vmatprep.subr.mxu1 %v617_v1  ;;  %v169_v28 = vld [vmem:[%s912_s5 + $0x28] sm:$0xff]  ;;  %v168_v29 = vld [vmem:[%s912_s5 + $0x20] sm:$0xff]  ;;  %v167_v30 = vld [vmem:[%s912_s5 + $0x18] sm:$0xff]  ;;  %p602_p3 = por %p601_p2, %p600_p1 }
   0xf   :  { %495 = vmatprep.subr.mxu0 %v617_v1  ;;  %521 = vmatpush3.msra.mxu1 %v177_v20  ;;  %v166_v31 = vld [vmem:[%s912_s5 + $0x10] sm:$0xff]  ;;  %v165_v32 = vld [vmem:[%s912_s5 + $0x8] sm:$0xff]  ;;  %v164_v33 = vld [vmem:[%s912_s5] sm:$0xff] }
  0x10   :  { %496 = vmatpush3.msra.mxu0 %v48_v8  ;;  %522 = vmatprep.subr.mxu1 %v617_v1  ;;  %v144_v57 = vld [vmem:[%s910_s3] sm:$0x1]  ;;  %v303_v3 = vld [vmem:[%s915_s8 + $0x78] sm:$0xff]  ;;  %v302_v4 = vld [vmem:[%s915_s8 + $0x70] sm:$0xff]  ;;  %p603_p4 = pnand %p602_p3, %p596_p0 }
  0x11   :  { %497 = vmatprep.subr.mxu0 %v617_v1  ;;  %523 = vmatpush3.msra.mxu1 %v176_v21  ;;  %v427_v63 = vld [vmem:[%s911_s4] ss:$0 sm:$0xff]  ;;  %v301_v5 = vld [vmem:[%s915_s8 + $0x68] sm:$0xff]  ;;  %v299_v7 = vld [vmem:[%s915_s8 + $0x58] sm:$0xff] }
  0x12   :  { %498 = vmatpush3.msra.mxu0 %v47_v9  ;;  %524 = vmatprep.subr.mxu1 %v617_v1  ;;  %v300_v6 = vld [vmem:[%s915_s8 + $0x60] sm:$0xff]  ;;  %v298_v8 = vld [vmem:[%s915_s8 + $0x50] sm:$0xff]  ;;  %v297_v9 = vld [vmem:[%s915_s8 + $0x48] sm:$0xff] }
  0x13   :  { %499 = vmatprep.subr.mxu0 %v617_v1  ;;  %525 = vmatpush3.msra.mxu1 %v175_v22  ;;  %v288_v18 = vld [vmem:[%s915_s8] sm:$0xff] }
  0x14   :  { %500 = vmatpush3.msra.mxu0 %v46_v10  ;;  %526 = vmatprep.subr.mxu1 %v617_v1  ;;  %v296_v10 = vld [vmem:[%s915_s8 + $0x40] sm:$0xff] }
  0x15   :  { %501 = vmatprep.subr.mxu0 %v617_v1  ;;  %527 = vmatpush3.msra.mxu1 %v174_v23 }
  0x16   :  { %502 = vmatpush3.msra.mxu0 %v45_v11  ;;  %528 = vmatprep.subr.mxu1 %v617_v1  ;;  %v295_v11 = vld [vmem:[%s915_s8 + $0x38] sm:$0xff] }
  0x17   :  { %503 = vmatprep.subr.mxu0 %v617_v1  ;;  %529 = vmatpush3.msra.mxu1 %v173_v24 }
  0x18   :  { %504 = vmatpush3.msra.mxu0 %v44_v12  ;;  %530 = vmatprep.subr.mxu1 %v617_v1  ;;  %v294_v12 = vld [vmem:[%s915_s8 + $0x30] sm:$0xff] }
  0x19   :  { %505 = vmatprep.subr.mxu0 %v617_v1  ;;  %531 = vmatpush3.msra.mxu1 %v172_v25 }
  0x1a   :  { %506 = vmatpush3.msra.mxu0 %v43_v13  ;;  %532 = vmatprep.subr.mxu1 %v617_v1  ;;  %v293_v13 = vld [vmem:[%s915_s8 + $0x28] sm:$0xff] }
  0x1b   :  { %507 = vmatprep.subr.mxu0 %v617_v1  ;;  %533 = vmatpush3.msra.mxu1 %v171_v26 }
  0x1c   :  { %508 = vmatpush3.msra.mxu0 %v42_v14  ;;  %534 = vmatprep.subr.mxu1 %v617_v1  ;;  %v292_v14 = vld [vmem:[%s915_s8 + $0x20] sm:$0xff] }
  0x1d   :  { %509 = vmatprep.subr.mxu0 %v617_v1  ;;  %535 = vmatpush3.msra.mxu1 %v170_v27 }
  0x1e   :  { %510 = vmatpush3.msra.mxu0 %v41_v15  ;;  %536 = vmatprep.subr.mxu1 %v617_v1  ;;  %v291_v15 = vld [vmem:[%s915_s8 + $0x18] sm:$0xff] }
  0x1f   :  { %511 = vmatprep.subr.mxu0 %v617_v1  ;;  %537 = vmatpush3.msra.mxu1 %v169_v28 }
  0x20   :  { %512 = vmatpush3.msra.mxu0 %v40_v16  ;;  %538 = vmatprep.subr.mxu1 %v617_v1  ;;  %v290_v16 = vld [vmem:[%s915_s8 + $0x10] sm:$0xff] }
  0x21   :  { %514 = vmatmul.mubr.f32.vlgmr.msra.gmra.mxu0 %v39_v17  ;;  %551 = vmatprep.subr.mxu0 %v617_v1  ;;  %v289_v17 = vld [vmem:[%s915_s8 + $0x8] sm:$0xff] }
  0x22   :  { %583 = vmatprep.mubr.msk.f32.mxu0 %vm618_vm0, %v617_v1  ;;  %539 = vmatpush3.msra.mxu1 %v168_v29 }
  0x23   :  { %540 = vmatprep.subr.mxu1 %v617_v1  ;;  %552 = vmatpush3.msra.mxu0 %v303_v3 }
  0x24   :  { %541 = vmatpush3.msra.mxu1 %v167_v30  ;;  %553 = vmatprep.subr.mxu0 %v617_v1 }
  0x25   :  { %542 = vmatprep.subr.mxu1 %v617_v1  ;;  %554 = vmatpush3.msra.mxu0 %v302_v4 }
  0x26   :  { %543 = vmatpush3.msra.mxu1 %v166_v31  ;;  %555 = vmatprep.subr.mxu0 %v617_v1 }
  0x27   :  { %544 = vmatprep.subr.mxu1 %v617_v1  ;;  %556 = vmatpush3.msra.mxu0 %v301_v5 }
  0x28   :  { %545 = vmatpush3.msra.mxu1 %v165_v32  ;;  %557 = vmatprep.subr.mxu0 %v617_v1 }
  0x29   :  { %546 = vmatprep.subr.mxu1 %v617_v1  ;;  %558 = vmatpush3.msra.mxu0 %v300_v6  ;;  %v392_v6 = vld [vmem:[%s916_s9] sm:$0x1] }
  0x2a   :  { %547 = vmatpush3.msra.mxu1 %v164_v33  ;;  %559 = vmatprep.subr.mxu0 %v617_v1 }
  0x2b   :  { %560 = vmatpush3.msra.mxu0 %v299_v7 }
  0x2c   :  { %561 = vmatprep.subr.mxu0 %v617_v1 }
  0x2d   :  { %562 = vmatpush3.msra.mxu0 %v298_v8 }
  0x2e   :  { %563 = vmatprep.subr.mxu0 %v617_v1 }
  0x2f   :  { %564 = vmatpush3.msra.mxu0 %v297_v9 }
  0x30   :  { %565 = vmatprep.subr.mxu0 %v617_v1 }
  0x31   :  { %566 = vmatpush3.msra.mxu0 %v296_v10 }
  0x32   :  { %567 = vmatprep.subr.mxu0 %v617_v1 }
  0x33   :  { %568 = vmatpush3.msra.mxu0 %v295_v11  ;;  %v429_v11 = vld [vmem:[%s917_s10] ss:$0 sm:$0xff] }
  0x34   :  { %569 = vmatprep.subr.mxu0 %v617_v1 }
  0x35   :  { %570 = vmatpush3.msra.mxu0 %v294_v12 }
  0x36   :  { %571 = vmatprep.subr.mxu0 %v617_v1 }
  0x37   :  { %572 = vmatpush3.msra.mxu0 %v293_v13 }
  0x38   :  { %573 = vmatprep.subr.mxu0 %v617_v1 }
  0x39   :  { %574 = vmatpush3.msra.mxu0 %v292_v14 }
  0x3a   :  { %575 = vmatprep.subr.mxu0 %v617_v1 }
  0x3b   :  { %576 = vmatpush3.msra.mxu0 %v291_v15 }
  0x3c   :  { %577 = vmatprep.subr.mxu0 %v617_v1 }
  0x3d   :  { %578 = vmatpush3.msra.mxu0 %v290_v16 }
  0x3e   :  { %579 = vmatprep.subr.mxu0 %v617_v1 }
  0x3f   :  { %580 = vmatpush3.msra.mxu0 %v289_v17 }
  0x40   :  { %581 = vmatprep.subr.mxu0 %v617_v1 }
  0x41   :  { %582 = vmatpush3.msra.mxu0 %v288_v18 }
  0xe1   :  { %v122_v34 = vpop.f32.mrf.mxu0 }
  0xe2   :  { %v126_v35 = vrot.slane %v122_v34, 4  ;;  %v132_v36 = vmul.f32 %v122_v34, %v122_v34 }
  0xe3   :  { %v515_v37 = vpop.f32.mrf.mxu0 }
  0xe4   :  { %v127_v38 = vadd.f32 %v126_v35, %v122_v34  ;;  %v133_v39 = vrot.slane %v132_v36, 4 }
  0xe6   :  { %v128_v40 = vrot.slane %v127_v38, 2  ;;  %v134_v41 = vadd.f32 %v133_v39, %v132_v36  ;;  %v268_v39 = vld [vmem:[%s913_s6] sm:$0x1] }
  0xe8   :  { %v129_v42 = vadd.f32 %v128_v40, %v127_v38  ;;  %v135_v43 = vrot.slane %v134_v41, 2 }
  0xea   :  { %v130_v44 = vrot.slane %v129_v42, 1  ;;  %v136_v45 = vadd.f32 %v135_v43, %v134_v41 }
  0xec   :  { %v131_v46 = vadd.f32 %v130_v44, %v129_v42  ;;  %v137_v47 = vrot.slane %v136_v45, 1  ;;  %v428_v44 = vld [vmem:[%s914_s7] ss:$0 sm:$0xff] }
  0xee   :  { %v138_v48 = vadd.f32 %v137_v47, %v136_v45  ;;  %v139_v49 = vmul.f32 0.125, %v131_v46 }
  0xf0   :  { %v140_v50 = vmul.f32 0.125, %v138_v48  ;;  %v141_v51 = vmul.f32 %v139_v49, %v139_v49  ;;  %v148_v61 = vsub.f32 %v122_v34, %v139_v49 }
  0xf2   :  { %v142_v52 = vsub.f32 %v140_v50, %v141_v51 }
  0xf4   :  { %v143_v53 = vmax.f32 %v142_v52, 0.0 }
  0xf6   :  { %v145_v54 = vadd.f32 1e-05, %v143_v53 }
  0xf8   :  { %589 = vrsqrt.f32 %v145_v54 }
 0x105   :  { %v590_v59 = vpop.eup %589 }
 0x106   :  { %v147_v60 = vmul.f32 %v590_v59, %v144_v57 }
 0x108   :  { %v153_v62 = vrot.slane %v147_v60, %v821_v58 }
 0x10a   :  { %v155_v0 = vmul.f32 %v153_v62, %v148_v61 }
 0x10c   :  { %v163_v2 = vadd.f32 %v427_v63, %v155_v0 }
 0x10e   :  { %549 = vmatmul.mubr.f32.vlgmr.msra.gmra.mxu1 %v163_v2 }
 0x1ce   :  { %v246_v19 = vpop.f32.mrf.mxu1 }
 0x1cf   :  { %v250_v20 = vrot.slane %v246_v19, 4  ;;  %v256_v21 = vmul.f32 %v246_v19, %v246_v19 }
 0x1d0   :  { %v550_v22 = vpop.f32.mrf.mxu1 }
 0x1d1   :  { %v251_v23 = vadd.f32 %v250_v20, %v246_v19  ;;  %v257_v24 = vrot.slane %v256_v21, 4 }
 0x1d3   :  { %v252_v25 = vrot.slane %v251_v23, 2  ;;  %v258_v26 = vadd.f32 %v257_v24, %v256_v21 }
 0x1d5   :  { %v253_v27 = vadd.f32 %v252_v25, %v251_v23  ;;  %v259_v28 = vrot.slane %v258_v26, 2 }
 0x1d7   :  { %v254_v29 = vrot.slane %v253_v27, 1  ;;  %v260_v30 = vadd.f32 %v259_v28, %v258_v26 }
 0x1d9   :  { %v255_v31 = vadd.f32 %v254_v29, %v253_v27  ;;  %v261_v32 = vrot.slane %v260_v30, 1 }
 0x1db   :  { %v262_v33 = vadd.f32 %v261_v32, %v260_v30  ;;  %v263_v34 = vmul.f32 0.125, %v255_v31 }
 0x1dd   :  { %v264_v35 = vmul.f32 0.125, %v262_v33  ;;  %v265_v36 = vmul.f32 %v263_v34, %v263_v34  ;;  %v272_v42 = vsub.f32 %v246_v19, %v263_v34 }
 0x1df   :  { %v266_v1 = vsub.f32 %v264_v35, %v265_v36 }
 0x1e1   :  { %v267_v37 = vmax.f32 %v266_v1, 0.0 }
 0x1e3   :  { %v269_v38 = vadd.f32 1e-05, %v267_v37 }
 0x1e5   :  { %591 = vrsqrt.f32 %v269_v38 }
 0x1f2   :  { %v592_v40 = vpop.eup %591 }
 0x1f3   :  { %v271_v41 = vmul.f32 %v592_v40, %v268_v39 }
 0x1f5   :  { %v277_v43 = vrot.slane %v271_v41, %v821_v58 }
 0x1f7   :  { %v279_v45 = vmul.f32 %v277_v43, %v272_v42 }
 0x1f9   :  { %v287_v46 = vadd.f32 %v428_v44, %v279_v45 }
 0x1fb   :  { %584 = vmatmul.mubr.f32.vlgmr.msra.gmra.mxu0 %v287_v46 }
 0x2bb   :  { %v370_v47 = vpop.f32.mrf.mxu0 }
 0x2bc   :  { %v374_v48 = vrot.slane %v370_v47, 4  ;;  %v380_v49 = vmul.f32 %v370_v47, %v370_v47 }
 0x2bd   :  { %v585_v50 = vpop.f32.mrf.mxu0 }
 0x2be   :  { %v375_v51 = vadd.f32 %v374_v48, %v370_v47  ;;  %v381_v52 = vrot.slane %v380_v49, 4 }
 0x2c0   :  { %v376_v53 = vrot.slane %v375_v51, 2  ;;  %v382_v54 = vadd.f32 %v381_v52, %v380_v49 }
 0x2c2   :  { %v377_v55 = vadd.f32 %v376_v53, %v375_v51  ;;  %v383_v56 = vrot.slane %v382_v54, 2 }
 0x2c4   :  { %v378_v57 = vrot.slane %v377_v55, 1  ;;  %v384_v59 = vadd.f32 %v383_v56, %v382_v54 }
 0x2c6   :  { %v379_v60 = vadd.f32 %v378_v57, %v377_v55  ;;  %v385_v61 = vrot.slane %v384_v59, 1 }
 0x2c8   :  { %v386_v62 = vadd.f32 %v385_v61, %v384_v59  ;;  %v387_v63 = vmul.f32 0.125, %v379_v60 }
 0x2ca   :  { %v388_v0 = vmul.f32 0.125, %v386_v62  ;;  %v389_v2 = vmul.f32 %v387_v63, %v387_v63  ;;  %v396_v9 = vsub.f32 %v370_v47, %v387_v63 }
 0x2cc   :  { %v390_v3 = vsub.f32 %v388_v0, %v389_v2 }
 0x2ce   :  { %v391_v4 = vmax.f32 %v390_v3, 0.0 }
 0x2d0   :  { %v393_v5 = vadd.f32 1e-05, %v391_v4 }
 0x2d2   :  { %593 = vrsqrt.f32 %v393_v5 }
 0x2df   :  { %v594_v7 = vpop.eup %593 }
 0x2e0   :  { %v395_v8 = vmul.f32 %v594_v7, %v392_v6 }
 0x2e2   :  { %v401_v10 = vrot.slane %v395_v8, %v821_v58 }
 0x2e4   :  { %v403_v12 = vmul.f32 %v401_v10, %v396_v9 }
 0x2e6   :  { %v411_v13 = vadd.f32 %v429_v11, %v403_v12 }
 0x2e8   :  { %412 = vst [vmem:[#allocation2] sm:$0xff] %v411_v13 }
 0x2e9   :  { %606 = shalt.err (!%p603_p4)
}
 0x2ea   :  { %422 = dma.vmem_to_hbm [thread:$0]  %s420_s2, 128, %s918_s11, [#allocation3]  }
 0x2eb   :  { %615 = dma.done.wait [#allocation3], 128  }
 0x2ec   :  { %616 = vsyncadd [#allocation3], 4294967168 }
 0x2ed   :  { %426 = vsyncpa [#allocation3], 1 }

</bundles_post_ra>
